<compile_context>
chip_gen: v5e
topology: v5e:2x2
jax: 0.10.0
libtpu: 0.0.40
codegen_flags: <defaults>
</compile_context>

<pallas_src>
import functools

import jax
import jax.numpy as jnp
from jax.experimental import pallas as pl
from jax.experimental.pallas import tpu as pltpu


# ----------------------------------------------------------------------------
# Fused Pallas kernel
# ----------------------------------------------------------------------------
def _fused_forward_kernel(*refs, num_layers, hidden_size, bidirectional):
    """Fused bi-LSTM (seq_len == 1) + fc1/relu/fc2 head.

    Ref order: emb (Bb,E), feat (Bb,F), w0 (E+F+1, nd*3H),
               w_upper[l] (nd*H+1, nd*3H) for l = 1..L-1,
               w1 (nd*H+1, H), w2 (H+1, C_pad), out (Bb, C_pad).
    Every weight carries its bias as the last row; gate column packing is
    [i_0|o_0|(i_1|o_1) | g_0|(g_1)] (dead f-gate removed at init).
    """
    H = hidden_size
    nd = 2 if bidirectional else 1
    it = iter(refs)
    emb_ref, feat_ref, w0_ref = next(it), next(it), next(it)
    upper_refs = [next(it) for _ in range(num_layers - 1)]
    w1_ref, w2_ref, out_ref = next(it), next(it), next(it)

    Bb = emb_ref.shape[0]
    ones = jnp.ones((Bb, 1), jnp.float32)   # bias row selector (folded biases)

    def bdot(x_f32, w_ref):
        # bf16 MXU operands, f32 accumulation; elementwise math stays f32.
        return jnp.dot(x_f32.astype(w_ref.dtype), w_ref[...],
                       preferred_element_type=jnp.float32)

    def cell(gates):
        # ONE contiguous sigmoid slice (2*nd*H) and ONE contiguous tanh slice
        # (nd*H); sigmoid(x) = 0.5*(1 + tanh(x/2)) -> single EUP tanh pass.
        sig = 0.5 * (1.0 + jnp.tanh(0.5 * gates[:, : 2 * nd * H]))
        th = jnp.tanh(gates[:, 2 * nd * H:])
        hs = []
        for d in range(nd):
            i_d = sig[:, 2 * d * H:(2 * d + 1) * H]
            o_d = sig[:, (2 * d + 1) * H:(2 * d + 2) * H]
            g_d = th[:, d * H:(d + 1) * H]
            # c0 == 0  =>  c = i * g,   h = o * tanh(c)
            hs.append(o_d * jnp.tanh(i_d * g_d))
        return hs[0] if nd == 1 else jnp.concatenate(hs, axis=-1)  # [h_f | h_b]

    # ---- Layer 0: (emb | feat | 1) lane concat, both directions + bias in ONE matmul.
    x0 = jnp.concatenate([emb_ref[...], feat_ref[...], ones], axis=-1)
    h = cell(bdot(x0, w0_ref))

    # ---- Upper layers: fwd/bwd fused via block-diagonal weights (one MXU
    # round trip + one sigmoid/tanh pass per layer).
    for w_ref in upper_refs:
        h = cell(bdot(jnp.concatenate([h, ones], axis=-1), w_ref))

    # ---- Head: fc1 on the already-materialized [h_f | h_b] in a single dot,
    # relu, then fc2 into a 128-lane-padded output (wrapper slices back to C).
    # TODO(synk): nn.Dropout is identity in eval mode; training dropout not modeled.
    hid = jnp.maximum(bdot(jnp.concatenate([h, ones], axis=-1), w1_ref), 0.0)
    out_ref[...] = bdot(jnp.concatenate([hid, ones], axis=-1), w2_ref)


# ----------------------------------------------------------------------------
# Wrapper: single pallas_call, batch-parallel grid, weights VMEM-resident
# ----------------------------------------------------------------------------
def _pick_batch_block(batch):
    for blk in (512, 256, 128, 64, 32, 16, 8):
        if batch % blk == 0:
            return blk
    return batch  # tiny / ragged batch -> one full-array block


def dynamic_lstm_forward(params, embeddings, features):
    assert embeddings.ndim == 2 and features.ndim == 2, (
        "kernel is specialized to the seq_len == 1 forward() of DynamicLSTM")
    B, E = embeddings.shape
    F = features.shape[1]
    H = params["hidden_size"]
    C = params["num_classes"]
    w2 = params["w2"]
    c_pad = w2.shape[1]

    weights = [params["w0"], *params["w_upper"], params["w1"], w2]
    inputs = [embeddings.astype(jnp.float32), features.astype(jnp.float32), *weights]

    block_b = _pick_batch_block(B)
    grid = (B // block_b,)

    def act_spec(cols):
        return pl.BlockSpec((block_b, cols), lambda i: (i, 0))

    def weight_spec(w):
        return pl.BlockSpec(w.shape, lambda i: (0, 0))   # resident across batch blocks

    in_specs = [act_spec(E), act_spec(F)] + [weight_spec(w) for w in weights]
    out_specs = pl.BlockSpec((block_b, c_pad), lambda i: (i, 0))

    kern = functools.partial(
        _fused_forward_kernel,
        num_layers=params["num_layers"],
        hidden_size=H,
        bidirectional=params["bidirectional"],
    )
    out = pl.pallas_call(
        kern,
        out_shape=jax.ShapeDtypeStruct((B, c_pad), jnp.float32),
        grid=grid,
        in_specs=in_specs,
        out_specs=out_specs,
        compiler_params=pltpu.CompilerParams(dimension_semantics=("parallel",)),
    )(*inputs)
    return out[:, :C]


# ----------------------------------------------------------------------------
# Parameter init: mirrors the PyTorch module's parameter shapes, then drops the
# dead f-gate / W_hh, repacks gate columns, folds biases into a bias row, fuses
# directions (layer 0 dense, upper layers block-diagonal) and casts to bf16.
# ----------------------------------------------------------------------------
def init_params(key, embedding_dim, num_features, hidden_size, num_layers,
                num_classes, bidirectional=True, weight_dtype=jnp.bfloat16):
    E, F, H, C = embedding_dim, num_features, hidden_size, num_classes
    input_size = E + F
    nd = 2 if bidirectional else 1
    bound_lstm = 1.0 / (H ** 0.5)

    def uniform(k, shape, bound):
        return jax.random.uniform(k, shape, jnp.float32, -bound, bound)

    def raw_direction(k):
        # torch nn.LSTM per layer: W_ih (4H, Din) rows [i|f|g|o], b_ih, b_hh.
        # W_hh multiplies h0 == 0 for seq_len == 1 -> omitted entirely.
        layers = []
        for layer in range(num_layers):
            din = input_size if layer == 0 else H
            k, k1, k2, k3 = jax.random.split(k, 4)
            w_ih = uniform(k1, (4 * H, din), bound_lstm)
            b_ih = uniform(k2, (4 * H,), bound_lstm)
            b_hh = uniform(k3, (4 * H,), bound_lstm)
            layers.append((w_ih, b_ih + b_hh))
        return layers

    k_fwd, k_bwd, k_fc1w, k_fc1b, k_fc2w, k_fc2b = jax.random.split(key, 6)
    dirs = [raw_direction(k_fwd)]
    if bidirectional:
        dirs.append(raw_direction(k_bwd))

    def gate(w_ih, b, name):
        idx = {"i": 0, "g": 2, "o": 3}[name]        # f-gate (idx 1) is dead: c0 == 0
        return w_ih[idx * H:(idx + 1) * H, :].T, b[idx * H:(idx + 1) * H]

    def packed_weight(layer):
        """Augmented weight for one layer: [W ; bias_row], columns
        [i_0|o_0|(i_1|o_1) | g_0|(g_1)].  Layer 0 is dense over (emb|feat) rows;
        upper layers are block-diagonal over the [h_f|h_b] rows."""
        sig_w, sig_b, tanh_w, tanh_b = [], [], [], []
        for d, dp in enumerate(dirs):
            w_ih, b = dp[layer]
            wi, bi = gate(w_ih, b, "i")
            wo, bo = gate(w_ih, b, "o")
            wg, bg = gate(w_ih, b, "g")

            def place(w, _d=d):
                if layer == 0 or nd == 1:
                    return w
                full = jnp.zeros((nd * H, H), jnp.float32)
                return full.at[_d * H:(_d + 1) * H, :].set(w)

            sig_w += [place(wi), place(wo)]
            sig_b += [bi, bo]
            tanh_w += [place(wg)]
            tanh_b += [bg]
        w_cols = jnp.concatenate(sig_w + tanh_w, axis=1)
        b_row = jnp.concatenate(sig_b + tanh_b).reshape(1, -1)
        return jnp.concatenate([w_cols, b_row], axis=0).astype(weight_dtype)

    w0 = packed_weight(0)                                   # (E+F+1, nd*3H)
    w_upper = [packed_weight(layer) for layer in range(1, num_layers)]

    # fc1: Linear(nd*H -> H); fc2: Linear(H -> C), lane-padded to 128 outputs.
    bound1 = 1.0 / ((H * nd) ** 0.5)
    bound2 = 1.0 / (H ** 0.5)
    w1 = jnp.concatenate(
        [uniform(k_fc1w, (H, H * nd), bound1).T,
         uniform(k_fc1b, (1, H), bound1)], axis=0).astype(weight_dtype)   # (nd*H+1, H)
    c_pad = max(128, ((C + 127) // 128) * 128)
    w2_core = jnp.concatenate(
        [uniform(k_fc2w, (C, H), bound2).T,
         uniform(k_fc2b, (1, C), bound2)], axis=0)                        # (H+1, C)
    w2 = jnp.zeros((H + 1, c_pad), jnp.float32).at[:, :C].set(w2_core)
    w2 = w2.astype(weight_dtype)                                          # (H+1, C_pad)

    return {
        "hidden_size": H,
        "num_layers": num_layers,
        "bidirectional": bidirectional,
        "num_classes": C,
        "w0": w0,
        "w_upper": w_upper,
        "w1": w1,
        "w2": w2,
    }


# ----------------------------------------------------------------------------
# Main
# ----------------------------------------------------------------------------
if __name__ == "__main__":
    B = 2
    embedding_dim = 32
    num_features = 8
    hidden_size = 32
    num_layers = 2
    num_classes = 3

    key = jax.random.PRNGKey(0)
    k_param, k_emb, k_feat = jax.random.split(key, 3)

    params = init_params(k_param, embedding_dim, num_features, hidden_size,
                         num_layers, num_classes, bidirectional=True)

    embeddings = jax.random.normal(k_emb, (B, embedding_dim), jnp.float32)
    features = jax.random.normal(k_feat, (B, num_features), jnp.float32)

    logits = dynamic_lstm_forward(params, embeddings, features)
    jax.block_until_ready(logits)

    assert logits.shape == (B, num_classes), logits.shape
    assert logits.dtype == jnp.float32
    assert bool(jnp.all(jnp.isfinite(logits)))
    print("KERNEL_OK")
</pallas_src>

<mosaic_0001>
module attributes {stable_mosaic.version = 11 : i64} {
  func.func @_fused_forward_kernel(%arg0: i32, %arg1: memref<2x32xf32, #tpu.memory_space<vmem>>, %arg2: memref<2x8xf32, #tpu.memory_space<vmem>>, %arg3: memref<41x192xbf16, #tpu.memory_space<vmem>>, %arg4: memref<65x192xbf16, #tpu.memory_space<vmem>>, %arg5: memref<65x32xbf16, #tpu.memory_space<vmem>>, %arg6: memref<33x128xbf16, #tpu.memory_space<vmem>>, %arg7: memref<2x128xf32, #tpu.memory_space<vmem>>) attributes {dimension_semantics = [#tpu.dimension_semantics<parallel>], iteration_bounds = array<i64: 1>, scalar_prefetch = 0 : i64, scratch_operands = 0 : i64, tpu.core_type = #tpu.core_type<tc>, window_params = [{transform_indices = @transform_0, window_bounds = array<i64: 2, 32>}, {transform_indices = @transform_1, window_bounds = array<i64: 2, 8>}, {pipeline_mode = #tpu.pipeline_mode<synchronous>, transform_indices = @transform_2, window_bounds = array<i64: 41, 192>}, {pipeline_mode = #tpu.pipeline_mode<synchronous>, transform_indices = @transform_3, window_bounds = array<i64: 65, 192>}, {pipeline_mode = #tpu.pipeline_mode<synchronous>, transform_indices = @transform_4, window_bounds = array<i64: 65, 32>}, {pipeline_mode = #tpu.pipeline_mode<synchronous>, transform_indices = @transform_5, window_bounds = array<i64: 33, 128>}, {transform_indices = @transform_6, window_bounds = array<i64: 2, 128>}]} {
    %cst = arith.constant 1.000000e+00 : f32
    %0 = vector.broadcast %cst : f32 to vector<2x1xf32>
    %c0 = arith.constant 0 : index
    %c0_0 = arith.constant 0 : index
    %1 = vector.load %arg1[%c0, %c0_0] : memref<2x32xf32, #tpu.memory_space<vmem>>, vector<2x32xf32>
    %c0_1 = arith.constant 0 : index
    %c0_2 = arith.constant 0 : index
    %2 = vector.load %arg2[%c0_1, %c0_2] : memref<2x8xf32, #tpu.memory_space<vmem>>, vector<2x8xf32>
    %3 = tpu.concatenate %1, %2, %0 in 1 : vector<2x32xf32>, vector<2x8xf32>, vector<2x1xf32> -> vector<2x41xf32>
    %4 = arith.truncf %3 : vector<2x41xf32> to vector<2x41xbf16>
    %c0_3 = arith.constant 0 : index
    %c0_4 = arith.constant 0 : index
    %5 = vector.load %arg3[%c0_3, %c0_4] : memref<41x192xbf16, #tpu.memory_space<vmem>>, vector<41x192xbf16>
    %cst_5 = arith.constant dense<0.000000e+00> : vector<2x192xf32>
    %6 = tpu.matmul %4, %5, %cst_5 {dimension_numbers = #tpu.dot_dimension_numbers<[1], [0], [0], [1], [0, 0, 1, 1], [], []>} : vector<2x41xbf16>, vector<41x192xbf16>, vector<2x192xf32> -> vector<2x192xf32>
    %7 = vector.extract_strided_slice %6 {offsets = [0, 0], sizes = [2, 128], strides = [1, 1]} : vector<2x192xf32> to vector<2x128xf32>
    %cst_6 = arith.constant 5.000000e-01 : f32
    %8 = vector.broadcast %cst_6 : f32 to vector<2x128xf32>
    %9 = arith.mulf %8, %7 : vector<2x128xf32>
    %10 = math.tanh %9 : vector<2x128xf32>
    %cst_7 = arith.constant 1.000000e+00 : f32
    %11 = vector.broadcast %cst_7 : f32 to vector<2x128xf32>
    %12 = arith.addf %11, %10 : vector<2x128xf32>
    %cst_8 = arith.constant 5.000000e-01 : f32
    %13 = vector.broadcast %cst_8 : f32 to vector<2x128xf32>
    %14 = arith.mulf %13, %12 : vector<2x128xf32>
    %15 = vector.extract_strided_slice %6 {offsets = [0, 128], sizes = [2, 64], strides = [1, 1]} : vector<2x192xf32> to vector<2x64xf32>
    %16 = math.tanh %15 : vector<2x64xf32>
    %17 = vector.extract_strided_slice %14 {offsets = [0, 0], sizes = [2, 32], strides = [1, 1]} : vector<2x128xf32> to vector<2x32xf32>
    %18 = vector.extract_strided_slice %14 {offsets = [0, 32], sizes = [2, 32], strides = [1, 1]} : vector<2x128xf32> to vector<2x32xf32>
    %19 = vector.extract_strided_slice %16 {offsets = [0, 0], sizes = [2, 32], strides = [1, 1]} : vector<2x64xf32> to vector<2x32xf32>
    %20 = arith.mulf %17, %19 : vector<2x32xf32>
    %21 = math.tanh %20 : vector<2x32xf32>
    %22 = arith.mulf %18, %21 : vector<2x32xf32>
    %23 = vector.extract_strided_slice %14 {offsets = [0, 64], sizes = [2, 32], strides = [1, 1]} : vector<2x128xf32> to vector<2x32xf32>
    %24 = vector.extract_strided_slice %14 {offsets = [0, 96], sizes = [2, 32], strides = [1, 1]} : vector<2x128xf32> to vector<2x32xf32>
    %25 = vector.extract_strided_slice %16 {offsets = [0, 32], sizes = [2, 32], strides = [1, 1]} : vector<2x64xf32> to vector<2x32xf32>
    %26 = arith.mulf %23, %25 : vector<2x32xf32>
    %27 = math.tanh %26 : vector<2x32xf32>
    %28 = arith.mulf %24, %27 : vector<2x32xf32>
    %29 = tpu.concatenate %22, %28 in 1 : vector<2x32xf32>, vector<2x32xf32> -> vector<2x64xf32>
    %30 = tpu.concatenate %29, %0 in 1 : vector<2x64xf32>, vector<2x1xf32> -> vector<2x65xf32>
    %31 = arith.truncf %30 : vector<2x65xf32> to vector<2x65xbf16>
    %c0_9 = arith.constant 0 : index
    %c0_10 = arith.constant 0 : index
    %32 = vector.load %arg4[%c0_9, %c0_10] : memref<65x192xbf16, #tpu.memory_space<vmem>>, vector<65x192xbf16>
    %cst_11 = arith.constant dense<0.000000e+00> : vector<2x192xf32>
    %33 = tpu.matmul %31, %32, %cst_11 {dimension_numbers = #tpu.dot_dimension_numbers<[1], [0], [0], [1], [0, 0, 1, 1], [], []>} : vector<2x65xbf16>, vector<65x192xbf16>, vector<2x192xf32> -> vector<2x192xf32>
    %34 = vector.extract_strided_slice %33 {offsets = [0, 0], sizes = [2, 128], strides = [1, 1]} : vector<2x192xf32> to vector<2x128xf32>
    %cst_12 = arith.constant 5.000000e-01 : f32
    %35 = vector.broadcast %cst_12 : f32 to vector<2x128xf32>
    %36 = arith.mulf %35, %34 : vector<2x128xf32>
    %37 = math.tanh %36 : vector<2x128xf32>
    %cst_13 = arith.constant 1.000000e+00 : f32
    %38 = vector.broadcast %cst_13 : f32 to vector<2x128xf32>
    %39 = arith.addf %38, %37 : vector<2x128xf32>
    %cst_14 = arith.constant 5.000000e-01 : f32
    %40 = vector.broadcast %cst_14 : f32 to vector<2x128xf32>
    %41 = arith.mulf %40, %39 : vector<2x128xf32>
    %42 = vector.extract_strided_slice %33 {offsets = [0, 128], sizes = [2, 64], strides = [1, 1]} : vector<2x192xf32> to vector<2x64xf32>
    %43 = math.tanh %42 : vector<2x64xf32>
    %44 = vector.extract_strided_slice %41 {offsets = [0, 0], sizes = [2, 32], strides = [1, 1]} : vector<2x128xf32> to vector<2x32xf32>
    %45 = vector.extract_strided_slice %41 {offsets = [0, 32], sizes = [2, 32], strides = [1, 1]} : vector<2x128xf32> to vector<2x32xf32>
    %46 = vector.extract_strided_slice %43 {offsets = [0, 0], sizes = [2, 32], strides = [1, 1]} : vector<2x64xf32> to vector<2x32xf32>
    %47 = arith.mulf %44, %46 : vector<2x32xf32>
    %48 = math.tanh %47 : vector<2x32xf32>
    %49 = arith.mulf %45, %48 : vector<2x32xf32>
    %50 = vector.extract_strided_slice %41 {offsets = [0, 64], sizes = [2, 32], strides = [1, 1]} : vector<2x128xf32> to vector<2x32xf32>
    %51 = vector.extract_strided_slice %41 {offsets = [0, 96], sizes = [2, 32], strides = [1, 1]} : vector<2x128xf32> to vector<2x32xf32>
    %52 = vector.extract_strided_slice %43 {offsets = [0, 32], sizes = [2, 32], strides = [1, 1]} : vector<2x64xf32> to vector<2x32xf32>
    %53 = arith.mulf %50, %52 : vector<2x32xf32>
    %54 = math.tanh %53 : vector<2x32xf32>
    %55 = arith.mulf %51, %54 : vector<2x32xf32>
    %56 = tpu.concatenate %49, %55 in 1 : vector<2x32xf32>, vector<2x32xf32> -> vector<2x64xf32>
    %57 = tpu.concatenate %56, %0 in 1 : vector<2x64xf32>, vector<2x1xf32> -> vector<2x65xf32>
    %58 = arith.truncf %57 : vector<2x65xf32> to vector<2x65xbf16>
    %c0_15 = arith.constant 0 : index
    %c0_16 = arith.constant 0 : index
    %59 = vector.load %arg5[%c0_15, %c0_16] : memref<65x32xbf16, #tpu.memory_space<vmem>>, vector<65x32xbf16>
    %cst_17 = arith.constant dense<0.000000e+00> : vector<2x32xf32>
    %60 = tpu.matmul %58, %59, %cst_17 {dimension_numbers = #tpu.dot_dimension_numbers<[1], [0], [0], [1], [0, 0, 1, 1], [], []>} : vector<2x65xbf16>, vector<65x32xbf16>, vector<2x32xf32> -> vector<2x32xf32>
    %cst_18 = arith.constant 0.000000e+00 : f32
    %61 = vector.broadcast %cst_18 : f32 to vector<2x32xf32>
    %62 = arith.maximumf %60, %61 : vector<2x32xf32>
    %63 = tpu.concatenate %62, %0 in 1 : vector<2x32xf32>, vector<2x1xf32> -> vector<2x33xf32>
    %64 = arith.truncf %63 : vector<2x33xf32> to vector<2x33xbf16>
    %c0_19 = arith.constant 0 : index
    %c0_20 = arith.constant 0 : index
    %65 = vector.load %arg6[%c0_19, %c0_20] : memref<33x128xbf16, #tpu.memory_space<vmem>>, vector<33x128xbf16>
    %cst_21 = arith.constant dense<0.000000e+00> : vector<2x128xf32>
    %66 = tpu.matmul %64, %65, %cst_21 {dimension_numbers = #tpu.dot_dimension_numbers<[1], [0], [0], [1], [0, 0, 1, 1], [], []>} : vector<2x33xbf16>, vector<33x128xbf16>, vector<2x128xf32> -> vector<2x128xf32>
    %c0_22 = arith.constant 0 : index
    %c0_23 = arith.constant 0 : index
    %67 = vector.load %arg7[%c0_22, %c0_23] : memref<2x128xf32, #tpu.memory_space<vmem>>, vector<2x128xf32>
    tpu.vector_store %arg7[%c0_22, %c0_23], %66 {strides = array<i32>} : memref<2x128xf32, #tpu.memory_space<vmem>>, vector<2x128xf32>,
    return
  }
  func.func @transform_0(%arg0: i32) -> (i32, i32) {
    %c0_i32 = arith.constant 0 : i32
    %c0_i32_0 = arith.constant 0 : i32
    return %arg0, %c0_i32 : i32, i32
  }
  func.func @transform_1(%arg0: i32) -> (i32, i32) {
    %c0_i32 = arith.constant 0 : i32
    %c0_i32_0 = arith.constant 0 : i32
    return %arg0, %c0_i32 : i32, i32
  }
  func.func @transform_2(%arg0: i32) -> (i32, i32) {
    %c0_i32 = arith.constant 0 : i32
    %c0_i32_0 = arith.constant 0 : i32
    %c0_i32_1 = arith.constant 0 : i32
    return %c0_i32, %c0_i32_0 : i32, i32
  }
  func.func @transform_3(%arg0: i32) -> (i32, i32) {
    %c0_i32 = arith.constant 0 : i32
    %c0_i32_0 = arith.constant 0 : i32
    %c0_i32_1 = arith.constant 0 : i32
    return %c0_i32, %c0_i32_0 : i32, i32
  }
  func.func @transform_4(%arg0: i32) -> (i32, i32) {
    %c0_i32 = arith.constant 0 : i32
    %c0_i32_0 = arith.constant 0 : i32
    %c0_i32_1 = arith.constant 0 : i32
    return %c0_i32, %c0_i32_0 : i32, i32
  }
  func.func @transform_5(%arg0: i32) -> (i32, i32) {
    %c0_i32 = arith.constant 0 : i32
    %c0_i32_0 = arith.constant 0 : i32
    %c0_i32_1 = arith.constant 0 : i32
    return %c0_i32, %c0_i32_0 : i32, i32
  }
  func.func @transform_6(%arg0: i32) -> (i32, i32) {
    %c0_i32 = arith.constant 0 : i32
    %c0_i32_0 = arith.constant 0 : i32
    return %arg0, %c0_i32 : i32, i32
  }
}

</mosaic_0001>

<bundles_post_ra>
// kernel: tpu_custom_call.1
= control target key start
LH: loop header
LB: loop body
LE: loop exit
PB: predicated region body
PF: predicated region fallthrough
CT: control target
= control target key end

     0   :  { %11 = vsyncpa [#allocation3], 0  ;;  %s772_s0 = inlined_call_operand.vmem [shape: f32[2,32], index: 0, kind: input, shape index: {}]   ;;  %s773_s1 = inlined_call_operand.vmem [shape: f32[2,8], index: 1, kind: input, shape index: {}]   ;;  %s774_s2 = inlined_call_operand.vmem [shape: bf16[41,192], index: 2, kind: input, shape index: {}]   ;;  %s775_s3 = inlined_call_operand.hbm [shape: bf16[65,192], index: 3, kind: input, shape index: {}]   ;;  %s776_s4 = inlined_call_operand.vmem [shape: bf16[65,32], index: 4, kind: input, shape index: {}]   ;;  %s777_s5 = inlined_call_operand.hbm [shape: bf16[33,128], index: 5, kind: input, shape index: {}]   ;;  %s778_s6 = inlined_call_operand.hbm [shape: f32[2,128], index: 6, kind: output, shape index: {}]  }
   0x1   :  { %12 = vsyncpa [#allocation6], 0 }
   0x2   :  { %13 = vsyncpa [#allocation4], 0  ;;  %s24_s23 = sshll.u32 %s775_s3, 4  ;;  %s632_s24 = smov [#allocation2]   ;;  %s25_s23 = int_to_ptr.hbm [resolvable:$true] %s24_s23 }
   0x3   :  { %s26_s25 = sshll.u32 %s632_s24, 4  ;;  %s39_s28 = sshll.u32 %s777_s5, 4  ;;  %s27_s25 = int_to_ptr.vmem [resolvable:$true] %s26_s25  ;;  %s40_s28 = int_to_ptr.hbm [resolvable:$true] %s39_s28 }
   0x4   :  { %s633_s29 = smov 128   ;;  %s634_s30 = smov 8  }
   0x5   :  { %32 = dma.hbm_to_vmem [thread:$0]  %s25_s23, 1152, %s27_s25, [#allocation3], %s633_s29, %s633_s29, %s634_s30  }
   0x6   :  { %s635_s7 = smov [#allocation5]   ;;  %s636_s9 = smov 64  }
   0x7   :  { %s41_s8 = sshll.u32 %s635_s7, 4  ;;  %s637_s10 = smov 4   ;;  %s42_s8 = int_to_ptr.vmem [resolvable:$true] %s41_s8 }
   0x8   :  { %47 = dma.hbm_to_vmem [thread:$0]  %s40_s28, 320, %s42_s8, [#allocation6], %s636_s9, %s636_s9, %s637_s10  }
   0x9   :  { %626 = dma.done.wait [#allocation3], 1152  }
   0xa   :  { %627 = vsyncadd [#allocation3], 4294966144 }
   0xb   :  { %628 = dma.done.wait [#allocation6], 320  }
   0xc   :  { %629 = vsyncadd [#allocation6], 4294966976  ;;  %vm106_vm0 = vcmask 1043456   ;;  %vm107_vm1 = vcmask 1044480   ;;  %v638_v0 = vmov 65535   ;;  %s639_s15 = smov 32  }
   0xd   :  { %v108_v1 = vsel %vm106_vm0, 4294967295, %v638_v0  ;;  %v58_v3 = vld [vmem:[%s773_s1] sm:$0x3]  ;;  %v512_v5 = vld [vmem:[%s774_s2 + $0x24] sm:$0x10]  ;;  %vm63_vm2 = vcmask 261120  }
   0xe   :  { %v109_v2 = vsel %vm107_vm1, %v108_v1, 0  ;;  %v439_v4 = vld [vmem:[%s774_s2 + $0x20] sm:$0xf]  ;;  %60 = vrot.lane.b32.xlu0 %v58_v3, %s639_s15  ;;  %v511_v7 = vld [vmem:[%s774_s2 + $0x24] sm:$0xf]  ;;  %vm65_vm3 = vcmask 326656  }
   0xf   :  { %v440_v6 = vor.u32 %v512_v5, %v439_v4  ;;  %v441_v8 = vld [vmem:[%s774_s2 + $0x28] sm:$0x10]  ;;  %v431_v10 = vld [vmem:[%s774_s2 + $0x10] sm:$0xf]  ;;  %v510_v11 = vld [vmem:[%s774_s2 + $0x14] sm:$0xf0] }
  0x10   :  { %v444_v9 = vor.u32 %v511_v7, %v441_v8  ;;  %v509_v13 = vld [vmem:[%s774_s2 + $0x14] sm:$0xf]  ;;  %v433_v14 = vld [vmem:[%s774_s2 + $0x18] sm:$0xf0]  ;;  %v432_v16 = vor.u32 %v510_v11, %v431_v10  ;;  %v423_v18 = vld [vmem:[%s774_s2] sm:$0xf] }
  0x11   :  { %v111_v12 = vand.u32 %v440_v6, %v109_v2  ;;  %v436_v17 = vor.u32 %v509_v13, %v433_v14  ;;  %v508_v19 = vld [vmem:[%s774_s2 + $0x4] sm:$0xf0]  ;;  %v507_v20 = vld [vmem:[%s774_s2 + $0x4] sm:$0xf]  ;;  %v425_v22 = vld [vmem:[%s774_s2 + $0x8] sm:$0xf0] }
  0x12   :  { %v114_v15 = vand.u32 %v444_v9, %v109_v2  ;;  %v424_v21 = vor.u32 %v508_v19, %v423_v18  ;;  %v428_v23 = vor.u32 %v507_v20, %v425_v22  ;;  %v57_v24 = vld [vmem:[%s772_s0] sm:$0x3]  ;;  %vm102_vm4 = vcmask 334848   ;;  %s640_s0 = smov 96   ;;  %v473_v52 = vld [vmem:[#allocation2 + $0x30] sm:$0xf] }
  0x13   :  { %121 = vmatpush.bf16.msra.mxu0 %v111_v12  ;;  %v185_v45 = vld [vmem:[#allocation2 + $0x40] sm:$0x11]  ;;  %vm235_vm5 = vcmask 1040384   ;;  %v641_v48 = vmov 0   ;;  %v520_v53 = vld [vmem:[#allocation2 + $0x34] sm:$0xf0] }
  0x14   :  { %134 = vmatpush.bf16.msra.mxu1 %v114_v15  ;;  %v211_v46 = vunpack.c.l.b16 %v185_v45  ;;  %v212_v47 = vunpack.c.h.b16 %v185_v45  ;;  %v734_v49 = vsel %vm235_vm5, 65535, %v641_v48  ;;  %v519_v54 = vld [vmem:[#allocation2 + $0x34] sm:$0xf]  ;;  %v475_v55 = vld [vmem:[#allocation2 + $0x38] sm:$0xf0]  ;;  %v474_v58 = vor.u32 %v520_v53, %v473_v52  ;;  %v522_v45 = vld [vmem:[%s776_s4 + $0x8] sm:$0xff] }
  0x15   :  { %v478_v59 = vor.u32 %v519_v54, %v475_v55  ;;  %v465_v60 = vld [vmem:[#allocation2 + $0x20] sm:$0xf]  ;;  %v518_v61 = vld [vmem:[#allocation2 + $0x24] sm:$0xf0]  ;;  %v517_v62 = vld [vmem:[#allocation2 + $0x24] sm:$0xf] }
  0x16   :  { %v221_v50 = vpack.c.b16 %v211_v46, %v211_v46  ;;  %v222_v51 = vpack.c.b16 %v212_v47, %v212_v47  ;;  %v467_v63 = vld [vmem:[#allocation2 + $0x28] sm:$0xf0]  ;;  %v466_v0 = vor.u32 %v518_v61, %v465_v60  ;;  %v457_v2 = vld [vmem:[#allocation2 + $0x10] sm:$0xf]  ;;  %v516_v3 = vld [vmem:[#allocation2 + $0x14] sm:$0xf0] }
  0x17   :  { %122 = vmatpush.bf16.msra.mxu0 %v432_v16  ;;  %v470_v1 = vor.u32 %v517_v62, %v467_v63  ;;  %v515_v4 = vld [vmem:[#allocation2 + $0x14] sm:$0xf]  ;;  %v459_v5 = vld [vmem:[#allocation2 + $0x18] sm:$0xf0]  ;;  %v458_v6 = vor.u32 %v516_v3, %v457_v2  ;;  %v449_v10 = vld [vmem:[#allocation2] sm:$0xf] }
  0x18   :  { %135 = vmatpush.bf16.msra.mxu1 %v436_v17  ;;  %v239_v56 = vand.u32 %v734_v49, %v221_v50  ;;  %v242_v57 = vand.u32 %v734_v49, %v222_v51  ;;  %v462_v7 = vor.u32 %v515_v4, %v459_v5  ;;  %v514_v11 = vld [vmem:[#allocation2 + $0x4] sm:$0xf0]  ;;  %v513_v12 = vld [vmem:[#allocation2 + $0x4] sm:$0xf]  ;;  %v451_v14 = vld [vmem:[#allocation2 + $0x8] sm:$0xf0] }
  0x19   :  { %v450_v13 = vor.u32 %v514_v11, %v449_v10  ;;  %v454_v15 = vor.u32 %v513_v12, %v451_v14  ;;  %vm174_vm6 = vcmask 523264   ;;  %vm231_vm7 = vcmask 531456   ;;  %v521_v46 = vld [vmem:[%s776_s4] sm:$0xff]  ;;  %v366_v47 = vld [vmem:[#allocation5 + $0x10] sm:$0x1]  ;;  %v526_v52 = vld [vmem:[#allocation5 + $0x8] sm:$0xff] }
  0x1a   :  { %247 = vmatpush.bf16.msra.mxu2 %v239_v56  ;;  %260 = vmatpush.bf16.msra.mxu3 %v242_v57  ;;  %v376_v48 = vunpack.c.l.b16 %v366_v47  ;;  %vm382_vm8 = vcmask 269312   ;;  %s410_s22 = sshll.u32 %s778_s6, 4  ;;  %s411_s22 = int_to_ptr.hbm [resolvable:$true] %s410_s22 }
  0x1b   :  { %123 = vmatpush.bf16.msra.mxu0 %v424_v21 }
  0x1c   :  { %136 = vmatpush.bf16.msra.mxu1 %v428_v23  ;;  %v379_v50 = vpack.c.b16 %v376_v48, %v376_v48 }
  0x1e   :  { %248 = vmatpush.bf16.msra.mxu2 %v474_v58  ;;  %261 = vmatpush.bf16.msra.mxu3 %v478_v59  ;;  %v387_v51 = vand.u32 %v379_v50, %v734_v49  ;;  %v525_v58 = vld [vmem:[#allocation5] sm:$0xff] }
  0x20   :  { %394 = vmatpush.bf16.msrb.mxu1 %v387_v51 }
  0x22   :  { %249 = vmatpush.bf16.msra.mxu2 %v466_v0  ;;  %262 = vmatpush.bf16.msra.mxu3 %v470_v1 }
  0x24   :  { %395 = vmatpush.bf16.msrb.mxu1 %v526_v52 }
  0x26   :  { %250 = vmatpush.bf16.msra.mxu2 %v458_v6  ;;  %263 = vmatpush.bf16.msra.mxu3 %v462_v7 }
  0x28   :  { %396 = vmatpush.bf16.msrb.mxu1 %v525_v58 }
  0x2a   :  { %251 = vmatpush.bf16.msra.mxu2 %v450_v13  ;;  %264 = vmatpush.bf16.msra.mxu3 %v454_v15 }
  0x80   :  { %v61_v25 = vpop.permute.xlu0 %60 }
  0x81   :  { %v64_v26 = vsel %vm63_vm2, %v57_v24, %v61_v25 }
  0x82   :  { %v66_v27 = vsel %vm65_vm3, %v64_v26, 1.0 }
  0x83   :  { %v67_v28 = vpack.c.bf16 %v66_v27, %v66_v27 }
  0x85   :  { %445 = vmatmul.msk.bf16.vlgmr.msra.gmra.mxu0 %vm102_vm4, %v67_v28  ;;  %446 = vmatmul.msk.bf16.vlgmr.msra.gmra.mxu1 %vm102_vm4, %v67_v28 }
 0x102   :  { %v125_v29 = vpop.f32.mrf.mxu0  ;;  %v138_v30 = vpop.f32.mrf.mxu1 }
 0x103   :  { %v142_v31 = vmul.f32 0.5, %v125_v29  ;;  %538 = vtanh.f32 %v138_v30 }
 0x105   :  { %540 = vtanh.f32 %v142_v31 }
 0x109   :  { %v539_v32 = vpop.eup %538 }
 0x10a   :  { %155 = vrot.lane.b32.xlu0 %v539_v32, %s639_s15  ;;  %v127_v33 = vpop.f32.mrf.mxu0  ;;  %v140_v34 = vpop.f32.mrf.mxu1 }
 0x10b   :  { %v541_v35 = vpop.eup %540 }
 0x10c   :  { %v144_v36 = vadd.f32 1.0, %v541_v35 }
 0x10e   :  { %v145_v37 = vmul.f32 0.5, %v144_v36 }
 0x110   :  { %v147_v38 = vmul.f32 %v539_v32, %v145_v37 }
 0x112   :  { %542 = vtanh.f32 %v147_v38  ;;  %v312_v38 = vld [vmem:[%s776_s4 + $0x20] sm:$0x1] }
 0x118   :  { %v543_v39 = vpop.eup %542 }
 0x119   :  { %150 = vrot.lane.b32.xlu1 %v543_v39, %s639_s15 }
 0x17c   :  { %v156_v40 = vpop.permute.xlu0 %155 }
 0x17d   :  { %v158_v41 = vmul.f32 %v156_v40, %v145_v37  ;;  %v330_v40 = vunpack.c.l.b16 %v312_v38 }
 0x17f   :  { %544 = vtanh.f32 %v158_v41  ;;  %v335_v41 = vpack.c.b16 %v330_v40, %v330_v40 }
 0x185   :  { %v545_v42 = vpop.eup %544 }
 0x186   :  { %161 = vrot.lane.b32.xlu1 %v545_v42, %s639_s15  ;;  %v344_v42 = vand.u32 %v335_v41, %v734_v49 }
 0x188   :  { %349 = vmatpush.bf16.msrb.mxu0 %v344_v42 }
 0x18b   :  { %v151_v43 = vpop.permute.xlu1 %150 }
 0x18c   :  { %v153_v44 = vmul.f32 %v151_v43, %v145_v37  ;;  %v524_v43 = vld [vmem:[%s776_s4 + $0x18] sm:$0xff] }
 0x18d   :  { %350 = vmatpush.bf16.msrb.mxu0 %v524_v43 }
 0x18e   :  { %166 = vrot.lane.b32.xlu2 %v153_v44, %s640_s0  ;;  %v523_v44 = vld [vmem:[%s776_s4 + $0x10] sm:$0xff]  ;;  %s642_s4 = smov [#allocation7]  }
 0x18f   :  { %s408_s1 = sshll.u32 %s642_s4, 4  ;;  %s409_s1 = int_to_ptr.vmem [resolvable:$true] %s408_s1 }
 0x191   :  { %351 = vmatpush.bf16.msrb.mxu0 %v523_v44 }
 0x195   :  { %352 = vmatpush.bf16.msrb.mxu0 %v522_v45 }
 0x199   :  { %353 = vmatpush.bf16.msrb.mxu0 %v521_v46 }
 0x1e8   :  { %v167_v16 = vpop.permute.xlu2 %166 }
 0x1f8   :  { %v162_v8 = vpop.permute.xlu1 %161 }
 0x1f9   :  { %v164_v9 = vmul.f32 %v162_v8, %v145_v37 }
 0x1fb   :  { %170 = vrot.lane.b32.xlu2 %v164_v9, %s636_s9 }
 0x255   :  { %v171_v17 = vpop.permute.xlu2 %170 }
 0x256   :  { %v173_v18 = vsel %vm63_vm2, %v167_v16, %v171_v17 }
 0x257   :  { %v175_v19 = vsel %vm174_vm6, %v173_v18, 1.0 }
 0x258   :  { %v176_v20 = vpack.c.bf16 %v175_v19, %v175_v19 }
 0x25a   :  { %479 = vmatmul.msk.bf16.vlgmr.msra.gmra.mxu2 %vm231_vm7, %v176_v20  ;;  %480 = vmatmul.msk.bf16.vlgmr.msra.gmra.mxu3 %vm231_vm7, %v176_v20 }
 0x2dd   :  { %v253_v21 = vpop.f32.mrf.mxu2  ;;  %v266_v22 = vpop.f32.mrf.mxu3 }
 0x2de   :  { %v270_v23 = vmul.f32 0.5, %v253_v21  ;;  %546 = vtanh.f32 %v266_v22 }
 0x2e0   :  { %548 = vtanh.f32 %v270_v23 }
 0x2e4   :  { %v547_v24 = vpop.eup %546 }
 0x2e5   :  { %283 = vrot.lane.b32.xlu0 %v547_v24, %s639_s15  ;;  %v255_v25 = vpop.f32.mrf.mxu2  ;;  %v268_v26 = vpop.f32.mrf.mxu3 }
 0x2e6   :  { %v549_v27 = vpop.eup %548 }
 0x2e7   :  { %v272_v28 = vadd.f32 1.0, %v549_v27 }
 0x2e9   :  { %v273_v29 = vmul.f32 0.5, %v272_v28 }
 0x2eb   :  { %v275_v30 = vmul.f32 %v547_v24, %v273_v29 }
 0x2ed   :  { %550 = vtanh.f32 %v275_v30 }
 0x2f3   :  { %v551_v31 = vpop.eup %550 }
 0x2f4   :  { %278 = vrot.lane.b32.xlu1 %v551_v31, %s639_s15 }
 0x357   :  { %v284_v32 = vpop.permute.xlu0 %283 }
 0x358   :  { %v286_v33 = vmul.f32 %v284_v32, %v273_v29 }
 0x35a   :  { %552 = vtanh.f32 %v286_v33 }
 0x360   :  { %v553_v34 = vpop.eup %552 }
 0x361   :  { %289 = vrot.lane.b32.xlu2 %v553_v34, %s639_s15 }
 0x366   :  { %v279_v35 = vpop.permute.xlu1 %278 }
 0x367   :  { %v281_v36 = vmul.f32 %v279_v35, %v273_v29 }
 0x369   :  { %294 = vrot.lane.b32.xlu0 %v281_v36, %s640_s0 }
 0x3bb   :  { %v290_v37 = vpop.permute.xlu2 %289 }
 0x3bc   :  { %v292_v39 = vmul.f32 %v290_v37, %v273_v29 }
 0x3be   :  { %298 = vrot.lane.b32.xlu1 %v292_v39, %s636_s9 }
 0x3db   :  { %v295_v53 = vpop.permute.xlu0 %294 }
 0x430   :  { %v299_v54 = vpop.permute.xlu1 %298 }
 0x431   :  { %v301_v55 = vsel %vm63_vm2, %v295_v53, %v299_v54 }
 0x432   :  { %v302_v56 = vsel %vm174_vm6, %v301_v55, 1.0 }
 0x433   :  { %v303_v57 = vpack.c.bf16 %v302_v56, %v302_v56 }
 0x435   :  { %497 = vmatmul.msk.bf16.vlgmr.msrb.gmra.mxu0 %vm231_vm7, %v303_v57 }
 0x4b2   :  { %v355_v59 = vpop.f32.mrf.mxu0 }
 0x4b3   :  { %v359_v60 = vmax.f32 %v355_v59, 0.0 }
 0x4b5   :  { %v360_v61 = vsel %vm63_vm2, %v359_v60, 1.0 }
 0x4b6   :  { %v361_v49 = vpack.c.bf16 %v360_v61, %v360_v61 }
 0x4b8   :  { %506 = vmatmul.msk.bf16.vlgmr.msrb.gmra.mxu1 %vm382_vm8, %v361_v49 }
 0x4ba   :  { %v357_v62 = vpop.f32.mrf.mxu0 }
 0x535   :  { %v398_v63 = vpop.f32.mrf.mxu1 }
 0x536   :  { %402 = vst [vmem:[#allocation7] sm:$0x3] %v398_v63 }
 0x537   :  { %413 = dma.vmem_to_hbm [thread:$0]  %s409_s1, 32, %s411_s22, [#allocation4]  }
 0x53d   :  { %v400_v0 = vpop.f32.mrf.mxu1 }
 0x53e   :  { %630 = dma.done.wait [#allocation4], 32  }
 0x53f   :  { %631 = vsyncadd [#allocation4], 4294967264 }
 0x540   :  { %418 = vsyncpa [#allocation3], 1 }
 0x541   :  { %419 = vsyncpa [#allocation6], 1 }
 0x542   :  { %420 = vsyncpa [#allocation4], 1 }

</bundles_post_ra>
